<compile_context>
chip_gen: v7x
topology: tpu7x:2x2x1
jax: 0.10.0
libtpu: 0.0.40
codegen_flags: <defaults>
</compile_context>

<pallas_src>
import functools

import jax
import jax.numpy as jnp
from jax.experimental import pallas as pl
from jax.experimental.pallas import tpu as pltpu

EPS = 1e-5                    # PyTorch BatchNorm2d default eps


def _vmem_spec():
    # Whole array resident in VMEM (shapes are small; no grid tiling needed here).
    return pl.BlockSpec(memory_space=pltpu.MemorySpace.VMEM)


# ---------------------------------------------------------------------------
# Fused kernel: everything in (channels, rows) layout, rows = flattened (n, h, w)
# on the lane axis.
# ---------------------------------------------------------------------------
def _fused_bottleneck_kernel(x_ref, coords_ref, w1_ref, g1_ref, b1_ref,
                             w2_ref, ew_ref, eb_ref, y_ref,
                             w3_ref, g3_ref, b3_ref, o_ref,
                             *, n_batch, height, width):
    f32 = jnp.float32
    cin, m_rows = x_ref.shape
    cw = w1_ref.shape[0]
    inv_m = 1.0 / m_rows

    def bn(h):
        # One-pass batch statistics over the lane (row) axis: biased var, training mode.
        s = jnp.sum(h, axis=1, keepdims=True)
        ss = jnp.sum(h * h, axis=1, keepdims=True)
        mean = s * inv_m
        var = ss * inv_m - mean * mean
        return (h - mean) * jax.lax.rsqrt(var + EPS)

    row_i = coords_ref[0:1, :]      # (1, M) spatial row of each lane
    col_j = coords_ref[1:2, :]      # (1, M) spatial col of each lane
    n_idx = coords_ref[2:3, :]      # (1, M) batch element of each lane

    x = x_ref[...]                                                      # (Cin, M) f32

    # ---- stage 1: conv1x1 + bn1 + relu --------------------------------------
    h1 = jnp.dot(w1_ref[...], x, preferred_element_type=f32)            # (Cw, M)
    h1 = jnp.maximum(bn(h1) * g1_ref[...] + b1_ref[...], 0.0)

    # conv_upsample: stride == 1 -> identity.
    # TODO(synk): bilinear upsample (stride != 1, align_corners=True) not implemented.

    # ---- stage 2: conv3x3 via 9 lane-rolled + masked taps, one K=9*Cw GEMM ---
    taps = []
    for ky in range(3):
        for kx in range(3):
            dy, dx = ky - 1, kx - 1
            delta = dy * width + dx                       # lane shift within one sample
            if delta == 0:
                shifted = h1
            else:
                # output lane m reads h1 lane (m + delta); wraps are zeroed by the mask
                shifted = pltpu.roll(h1, shift=(-delta) % m_rows, axis=1)
            valid = ((row_i + dy >= 0) & (row_i + dy < height) &
                     (col_j + dx >= 0) & (col_j + dx < width))          # also kills batch crossings
            taps.append(jnp.where(valid, shifted, 0.0))
    patches = jnp.concatenate(taps, axis=0)                             # (9*Cw, M)
    h2 = jnp.dot(w2_ref[...], patches, preferred_element_type=f32)      # (Cw, M)
    h2 = bn(h2)

    # Conditional modulation: gb^T = embed_w^T @ y^T + b  -> (2*Cw, N)
    gb = jnp.dot(ew_ref[...], y_ref[...], preferred_element_type=f32) + eb_ref[...]
    gamma_t = gb[:cw, :]                                                # (Cw, N)
    beta_t = gb[cw:, :]                                                 # (Cw, N)
    row_gamma = jnp.zeros((cw, m_rows), f32)
    row_beta = jnp.zeros((cw, m_rows), f32)
    for n in range(n_batch):                   # small static loop; replaces onehot matmuls
        sel = n_idx == n
        row_gamma = jnp.where(sel, gamma_t[:, n:n + 1], row_gamma)
        row_beta = jnp.where(sel, beta_t[:, n:n + 1], row_beta)
    h2 = jnp.maximum((1.0 + row_gamma) * h2 + row_beta, 0.0)

    # ---- stage 3: conv1x1 + bn3 + residual + relu ----------------------------
    h3 = jnp.dot(w3_ref[...], h2, preferred_element_type=f32)           # (Cin, M)
    out = bn(h3) * g3_ref[...] + b3_ref[...] + x
    o_ref[...] = jnp.maximum(out, 0.0)


# ---------------------------------------------------------------------------
# Wrapper
# ---------------------------------------------------------------------------
def bottleneck_upatk_modulated(x_nchw, y, params):
    """x_nchw: (N, planes*4, H, W) float32, y: (N, cond_dim) float32 -> NCHW output."""
    n, cin, h, w = x_nchw.shape
    cw = params["w1"].shape[1]
    m = n * h * w
    hw = h * w
    f32 = jnp.float32

    # Channels-on-sublanes / rows-on-lanes layout straight from NCHW.
    x_cm = jnp.transpose(x_nchw.astype(f32), (1, 0, 2, 3)).reshape(cin, m)

    # Static per-lane coordinates (spatial row, spatial col, batch index): a tiny lookup
    # table so the kernel needs no in-kernel integer div/mod.
    lanes = jnp.arange(m, dtype=jnp.int32)
    coords = jnp.stack([(lanes % hw) // w, lanes % w, lanes // hw], axis=0)   # (3, M)

    # Weights in (C_out, C_in) orientation; conv2 flattened with (ky, kx, c_in) contraction order.
    w1_t = jnp.transpose(params["w1"]).astype(f32)                       # (Cw, Cin)
    w2_t = jnp.transpose(params["w2"].reshape(9 * cw, cw)).astype(f32)   # (Cw, 9*Cw)
    w3_t = jnp.transpose(params["w3"]).astype(f32)                       # (Cin, Cw)
    ew_t = jnp.transpose(params["embed_w"]).astype(f32)                  # (2*Cw, cond_dim)
    eb_t = params["embed_b"].reshape(2 * cw, 1).astype(f32)              # (2*Cw, 1)
    y_t = jnp.transpose(y.astype(f32))                                   # (cond_dim, N)
    g1 = params["bn1_gamma"].reshape(cw, 1).astype(f32)
    b1 = params["bn1_beta"].reshape(cw, 1).astype(f32)
    g3 = params["bn3_gamma"].reshape(cin, 1).astype(f32)
    b3 = params["bn3_beta"].reshape(cin, 1).astype(f32)

    kernel = functools.partial(_fused_bottleneck_kernel, n_batch=n, height=h, width=w)
    # TODO(synk): for large N*H*W add a parallel grid over the lane (row) axis with a
    # two-pass BN (stats accumulate + finalize) so v7x's second TensorCore gets work and
    # tiles fit its 64 MiB VMEM; at these shapes a single resident call is optimal.
    out_cm = pl.pallas_call(
        kernel,
        out_shape=jax.ShapeDtypeStruct((cin, m), f32),
        in_specs=[_vmem_spec()] * 12,
        out_specs=_vmem_spec(),
    )(x_cm, coords, w1_t, g1, b1, w2_t, ew_t, eb_t, y_t, w3_t, g3, b3)

    return jnp.transpose(out_cm.reshape(cin, n, h, w), (1, 0, 2, 3))     # back to NCHW


# ---------------------------------------------------------------------------
# Pure-JAX reference (independent formulation, all f32 like the kernel).
# ---------------------------------------------------------------------------
def reference(x_nchw, y, params):
    f32 = jnp.float32

    x = jnp.transpose(x_nchw, (0, 2, 3, 1)).astype(f32)   # NHWC
    n, h, w, cin = x.shape
    cw = params["w1"].shape[1]

    def bn(t):
        mean = jnp.mean(t, axis=(0, 1, 2), keepdims=True)
        var = jnp.mean(jnp.square(t - mean), axis=(0, 1, 2), keepdims=True)
        return (t - mean) * jax.lax.rsqrt(var + EPS)

    h1 = jnp.einsum("nhwc,cd->nhwd", x, params["w1"].astype(f32))
    h1 = jnp.maximum(bn(h1) * params["bn1_gamma"].reshape(-1)
                     + params["bn1_beta"].reshape(-1), 0.0)

    h1p = jnp.pad(h1, ((0, 0), (1, 1), (1, 1), (0, 0)))
    h2 = jnp.zeros((n, h, w, cw), f32)
    for ky in range(3):
        for kx in range(3):
            h2 = h2 + jnp.einsum("nhwc,cd->nhwd",
                                 h1p[:, ky:ky + h, kx:kx + w, :],
                                 params["w2"][ky, kx].astype(f32))
    h2 = bn(h2)
    gb = y.astype(f32) @ params["embed_w"].astype(f32) + params["embed_b"].reshape(1, -1)
    gamma = gb[:, :cw].reshape(n, 1, 1, cw)
    beta = gb[:, cw:].reshape(n, 1, 1, cw)
    h2 = jnp.maximum((1.0 + gamma) * h2 + beta, 0.0)

    h3 = jnp.einsum("nhwc,cd->nhwd", h2, params["w3"].astype(f32))
    out = jnp.maximum(bn(h3) * params["bn3_gamma"].reshape(-1)
                      + params["bn3_beta"].reshape(-1) + x, 0.0)
    return jnp.transpose(out, (0, 3, 1, 2))


if __name__ == "__main__":
    # Module hyper-params: planes=8 -> width=8; inplanes = planes*expansion = 32;
    # stride=1 (Identity conv_upsample), upsample=None, groups=1, dilation=1.
    N, planes, expansion, cond_dim, H, W = 2, 8, 4, 16, 8, 8
    Cin = planes * expansion   # 32
    Cw = planes                # 8

    key = jax.random.PRNGKey(0)
    keys = jax.random.split(key, 10)
    # NOTE: the PyTorch __init__ zeroes the embed weights; small random values are used
    # here so the modulation path is exercised numerically (forward formula unchanged).
    params = {
        "w1": 0.1 * jax.random.normal(keys[0], (Cin, Cw), jnp.float32),             # conv1x1 (in,out)
        "bn1_gamma": 1.0 + 0.1 * jax.random.normal(keys[1], (1, Cw), jnp.float32),
        "bn1_beta": 0.1 * jax.random.normal(keys[2], (1, Cw), jnp.float32),
        "w2": 0.1 * jax.random.normal(keys[3], (3, 3, Cw, Cw), jnp.float32),         # conv3x3 (kh,kw,in,out)
        "embed_w": 0.02 * jax.random.normal(keys[4], (cond_dim, 2 * Cw), jnp.float32),
        "embed_b": jnp.zeros((1, 2 * Cw), jnp.float32),
        "w3": 0.1 * jax.random.normal(keys[5], (Cw, Cin), jnp.float32),              # conv1x1 (in,out)
        "bn3_gamma": 1.0 + 0.1 * jax.random.normal(keys[6], (1, Cin), jnp.float32),
        "bn3_beta": 0.1 * jax.random.normal(keys[7], (1, Cin), jnp.float32),
    }

    x = jax.random.normal(keys[8], (N, Cin, H, W), jnp.float32)   # NCHW, like PyTorch
    y = jax.random.normal(keys[9], (N, cond_dim), jnp.float32)

    fused = jax.jit(bottleneck_upatk_modulated)
    out = jax.block_until_ready(fused(x, y, params))

    ref = reference(x, y, params)
    assert out.shape == (N, Cin, H, W), out.shape
    assert bool(jnp.allclose(out, ref, rtol=1e-2, atol=1e-2)), "Pallas output mismatch vs reference"

    print("KERNEL_OK")
</pallas_src>

<mosaic_0001>
module attributes {stable_mosaic.version = 11 : i64} {
  func.func @_fused_bottleneck_kernel(%arg0: memref<32x128xf32, #tpu.memory_space<vmem>>, %arg1: memref<3x128xi32, #tpu.memory_space<vmem>>, %arg2: memref<8x32xf32, #tpu.memory_space<vmem>>, %arg3: memref<8x1xf32, #tpu.memory_space<vmem>>, %arg4: memref<8x1xf32, #tpu.memory_space<vmem>>, %arg5: memref<8x72xf32, #tpu.memory_space<vmem>>, %arg6: memref<16x16xf32, #tpu.memory_space<vmem>>, %arg7: memref<16x1xf32, #tpu.memory_space<vmem>>, %arg8: memref<16x2xf32, #tpu.memory_space<vmem>>, %arg9: memref<32x8xf32, #tpu.memory_space<vmem>>, %arg10: memref<32x1xf32, #tpu.memory_space<vmem>>, %arg11: memref<32x1xf32, #tpu.memory_space<vmem>>, %arg12: memref<32x128xf32, #tpu.memory_space<vmem>>) attributes {dimension_semantics = [], scalar_prefetch = 0 : i64, scratch_operands = 0 : i64, tpu.core_type = #tpu.core_type<tc>} {
    %c0 = arith.constant 0 : index
    %c0_0 = arith.constant 0 : index
    %0 = vector.load %arg1[%c0, %c0_0] : memref<3x128xi32, #tpu.memory_space<vmem>>, vector<1x128xi32>
    %c1 = arith.constant 1 : index
    %c0_1 = arith.constant 0 : index
    %1 = vector.load %arg1[%c1, %c0_1] : memref<3x128xi32, #tpu.memory_space<vmem>>, vector<1x128xi32>
    %c2 = arith.constant 2 : index
    %c0_2 = arith.constant 0 : index
    %2 = vector.load %arg1[%c2, %c0_2] : memref<3x128xi32, #tpu.memory_space<vmem>>, vector<1x128xi32>
    %c0_3 = arith.constant 0 : index
    %c0_4 = arith.constant 0 : index
    %3 = vector.load %arg0[%c0_3, %c0_4] : memref<32x128xf32, #tpu.memory_space<vmem>>, vector<32x128xf32>
    %c0_5 = arith.constant 0 : index
    %c0_6 = arith.constant 0 : index
    %4 = vector.load %arg2[%c0_5, %c0_6] : memref<8x32xf32, #tpu.memory_space<vmem>>, vector<8x32xf32>
    %cst = arith.constant dense<0.000000e+00> : vector<8x128xf32>
    %5 = tpu.matmul %4, %3, %cst {dimension_numbers = #tpu.dot_dimension_numbers<[1], [0], [0], [1], [0, 0, 1, 1], [], []>} : vector<8x32xf32>, vector<32x128xf32>, vector<8x128xf32> -> vector<8x128xf32>
    %cst_7 = arith.constant dense<0.000000e+00> : vector<8xf32>
    %6 = vector.multi_reduction <add>, %5, %cst_7 [1] : vector<8x128xf32> to vector<8xf32>
    %7 = vector.shape_cast %6 : vector<8xf32> to vector<8x1xf32>
    %8 = arith.mulf %5, %5 : vector<8x128xf32>
    %cst_8 = arith.constant dense<0.000000e+00> : vector<8xf32>
    %9 = vector.multi_reduction <add>, %8, %cst_8 [1] : vector<8x128xf32> to vector<8xf32>
    %10 = vector.shape_cast %9 : vector<8xf32> to vector<8x1xf32>
    %cst_9 = arith.constant 7.812500e-03 : f32
    %11 = vector.broadcast %cst_9 : f32 to vector<8x1xf32>
    %12 = arith.mulf %7, %11 : vector<8x1xf32>
    %cst_10 = arith.constant 7.812500e-03 : f32
    %13 = vector.broadcast %cst_10 : f32 to vector<8x1xf32>
    %14 = arith.mulf %10, %13 : vector<8x1xf32>
    %15 = arith.mulf %12, %12 : vector<8x1xf32>
    %16 = arith.subf %14, %15 : vector<8x1xf32>
    %17 = vector.broadcast %12 : vector<8x1xf32> to vector<8x128xf32>
    %18 = arith.subf %5, %17 : vector<8x128xf32>
    %cst_11 = arith.constant 9.99999974E-6 : f32
    %19 = vector.broadcast %cst_11 : f32 to vector<8x1xf32>
    %20 = arith.addf %16, %19 : vector<8x1xf32>
    %21 = math.rsqrt %20 : vector<8x1xf32>
    %22 = vector.broadcast %21 : vector<8x1xf32> to vector<8x128xf32>
    %23 = arith.mulf %18, %22 : vector<8x128xf32>
    %c0_12 = arith.constant 0 : index
    %c0_13 = arith.constant 0 : index
    %24 = vector.load %arg3[%c0_12, %c0_13] : memref<8x1xf32, #tpu.memory_space<vmem>>, vector<8x1xf32>
    %25 = vector.broadcast %24 : vector<8x1xf32> to vector<8x128xf32>
    %26 = arith.mulf %23, %25 : vector<8x128xf32>
    %c0_14 = arith.constant 0 : index
    %c0_15 = arith.constant 0 : index
    %27 = vector.load %arg4[%c0_14, %c0_15] : memref<8x1xf32, #tpu.memory_space<vmem>>, vector<8x1xf32>
    %28 = vector.broadcast %27 : vector<8x1xf32> to vector<8x128xf32>
    %29 = arith.addf %26, %28 : vector<8x128xf32>
    %cst_16 = arith.constant 0.000000e+00 : f32
    %30 = vector.broadcast %cst_16 : f32 to vector<8x128xf32>
    %31 = arith.maximumf %29, %30 : vector<8x128xf32>
    %c9_i32 = arith.constant 9 : i32
    %32 = tpu.dynamic_rotate %31 by %c9_i32 dim 1 : vector<8x128xf32>, i32 -> vector<8x128xf32>
    %c-1_i32 = arith.constant -1 : i32
    %33 = vector.broadcast %c-1_i32 : i32 to vector<1x128xi32>
    %34 = arith.addi %0, %33 : vector<1x128xi32>
    %c0_i32 = arith.constant 0 : i32
    %35 = vector.broadcast %c0_i32 : i32 to vector<1x128xi32>
    %36 = arith.cmpi sge, %34, %35 : vector<1x128xi32>
    %c-1_i32_17 = arith.constant -1 : i32
    %37 = vector.broadcast %c-1_i32_17 : i32 to vector<1x128xi32>
    %38 = arith.addi %0, %37 : vector<1x128xi32>
    %c8_i32 = arith.constant 8 : i32
    %39 = vector.broadcast %c8_i32 : i32 to vector<1x128xi32>
    %40 = arith.cmpi slt, %38, %39 : vector<1x128xi32>
    %41 = arith.andi %36, %40 : vector<1x128xi1>
    %c-1_i32_18 = arith.constant -1 : i32
    %42 = vector.broadcast %c-1_i32_18 : i32 to vector<1x128xi32>
    %43 = arith.addi %1, %42 : vector<1x128xi32>
    %c0_i32_19 = arith.constant 0 : i32
    %44 = vector.broadcast %c0_i32_19 : i32 to vector<1x128xi32>
    %45 = arith.cmpi sge, %43, %44 : vector<1x128xi32>
    %46 = arith.andi %41, %45 : vector<1x128xi1>
    %c-1_i32_20 = arith.constant -1 : i32
    %47 = vector.broadcast %c-1_i32_20 : i32 to vector<1x128xi32>
    %48 = arith.addi %1, %47 : vector<1x128xi32>
    %c8_i32_21 = arith.constant 8 : i32
    %49 = vector.broadcast %c8_i32_21 : i32 to vector<1x128xi32>
    %50 = arith.cmpi slt, %48, %49 : vector<1x128xi32>
    %51 = arith.andi %46, %50 : vector<1x128xi1>
    %cst_22 = arith.constant 0.000000e+00 : f32
    %52 = vector.shape_cast %51 : vector<1x128xi1> to vector<1x128xi1>
    %53 = vector.broadcast %52 : vector<1x128xi1> to vector<8x128xi1>
    %54 = vector.broadcast %cst_22 : f32 to vector<8x128xf32>
    %55 = arith.select %53, %32, %54 : vector<8x128xi1>, vector<8x128xf32>
    %c8_i32_23 = arith.constant 8 : i32
    %56 = tpu.dynamic_rotate %31 by %c8_i32_23 dim 1 : vector<8x128xf32>, i32 -> vector<8x128xf32>
    %c-1_i32_24 = arith.constant -1 : i32
    %57 = vector.broadcast %c-1_i32_24 : i32 to vector<1x128xi32>
    %58 = arith.addi %0, %57 : vector<1x128xi32>
    %c0_i32_25 = arith.constant 0 : i32
    %59 = vector.broadcast %c0_i32_25 : i32 to vector<1x128xi32>
    %60 = arith.cmpi sge, %58, %59 : vector<1x128xi32>
    %c-1_i32_26 = arith.constant -1 : i32
    %61 = vector.broadcast %c-1_i32_26 : i32 to vector<1x128xi32>
    %62 = arith.addi %0, %61 : vector<1x128xi32>
    %c8_i32_27 = arith.constant 8 : i32
    %63 = vector.broadcast %c8_i32_27 : i32 to vector<1x128xi32>
    %64 = arith.cmpi slt, %62, %63 : vector<1x128xi32>
    %65 = arith.andi %60, %64 : vector<1x128xi1>
    %c0_i32_28 = arith.constant 0 : i32
    %66 = vector.broadcast %c0_i32_28 : i32 to vector<1x128xi32>
    %67 = arith.addi %1, %66 : vector<1x128xi32>
    %c0_i32_29 = arith.constant 0 : i32
    %68 = vector.broadcast %c0_i32_29 : i32 to vector<1x128xi32>
    %69 = arith.cmpi sge, %67, %68 : vector<1x128xi32>
    %70 = arith.andi %65, %69 : vector<1x128xi1>
    %c0_i32_30 = arith.constant 0 : i32
    %71 = vector.broadcast %c0_i32_30 : i32 to vector<1x128xi32>
    %72 = arith.addi %1, %71 : vector<1x128xi32>
    %c8_i32_31 = arith.constant 8 : i32
    %73 = vector.broadcast %c8_i32_31 : i32 to vector<1x128xi32>
    %74 = arith.cmpi slt, %72, %73 : vector<1x128xi32>
    %75 = arith.andi %70, %74 : vector<1x128xi1>
    %cst_32 = arith.constant 0.000000e+00 : f32
    %76 = vector.shape_cast %75 : vector<1x128xi1> to vector<1x128xi1>
    %77 = vector.broadcast %76 : vector<1x128xi1> to vector<8x128xi1>
    %78 = vector.broadcast %cst_32 : f32 to vector<8x128xf32>
    %79 = arith.select %77, %56, %78 : vector<8x128xi1>, vector<8x128xf32>
    %c7_i32 = arith.constant 7 : i32
    %80 = tpu.dynamic_rotate %31 by %c7_i32 dim 1 : vector<8x128xf32>, i32 -> vector<8x128xf32>
    %c-1_i32_33 = arith.constant -1 : i32
    %81 = vector.broadcast %c-1_i32_33 : i32 to vector<1x128xi32>
    %82 = arith.addi %0, %81 : vector<1x128xi32>
    %c0_i32_34 = arith.constant 0 : i32
    %83 = vector.broadcast %c0_i32_34 : i32 to vector<1x128xi32>
    %84 = arith.cmpi sge, %82, %83 : vector<1x128xi32>
    %c-1_i32_35 = arith.constant -1 : i32
    %85 = vector.broadcast %c-1_i32_35 : i32 to vector<1x128xi32>
    %86 = arith.addi %0, %85 : vector<1x128xi32>
    %c8_i32_36 = arith.constant 8 : i32
    %87 = vector.broadcast %c8_i32_36 : i32 to vector<1x128xi32>
    %88 = arith.cmpi slt, %86, %87 : vector<1x128xi32>
    %89 = arith.andi %84, %88 : vector<1x128xi1>
    %c1_i32 = arith.constant 1 : i32
    %90 = vector.broadcast %c1_i32 : i32 to vector<1x128xi32>
    %91 = arith.addi %1, %90 : vector<1x128xi32>
    %c0_i32_37 = arith.constant 0 : i32
    %92 = vector.broadcast %c0_i32_37 : i32 to vector<1x128xi32>
    %93 = arith.cmpi sge, %91, %92 : vector<1x128xi32>
    %94 = arith.andi %89, %93 : vector<1x128xi1>
    %c1_i32_38 = arith.constant 1 : i32
    %95 = vector.broadcast %c1_i32_38 : i32 to vector<1x128xi32>
    %96 = arith.addi %1, %95 : vector<1x128xi32>
    %c8_i32_39 = arith.constant 8 : i32
    %97 = vector.broadcast %c8_i32_39 : i32 to vector<1x128xi32>
    %98 = arith.cmpi slt, %96, %97 : vector<1x128xi32>
    %99 = arith.andi %94, %98 : vector<1x128xi1>
    %cst_40 = arith.constant 0.000000e+00 : f32
    %100 = vector.shape_cast %99 : vector<1x128xi1> to vector<1x128xi1>
    %101 = vector.broadcast %100 : vector<1x128xi1> to vector<8x128xi1>
    %102 = vector.broadcast %cst_40 : f32 to vector<8x128xf32>
    %103 = arith.select %101, %80, %102 : vector<8x128xi1>, vector<8x128xf32>
    %c1_i32_41 = arith.constant 1 : i32
    %104 = tpu.dynamic_rotate %31 by %c1_i32_41 dim 1 : vector<8x128xf32>, i32 -> vector<8x128xf32>
    %c0_i32_42 = arith.constant 0 : i32
    %105 = vector.broadcast %c0_i32_42 : i32 to vector<1x128xi32>
    %106 = arith.addi %0, %105 : vector<1x128xi32>
    %c0_i32_43 = arith.constant 0 : i32
    %107 = vector.broadcast %c0_i32_43 : i32 to vector<1x128xi32>
    %108 = arith.cmpi sge, %106, %107 : vector<1x128xi32>
    %c0_i32_44 = arith.constant 0 : i32
    %109 = vector.broadcast %c0_i32_44 : i32 to vector<1x128xi32>
    %110 = arith.addi %0, %109 : vector<1x128xi32>
    %c8_i32_45 = arith.constant 8 : i32
    %111 = vector.broadcast %c8_i32_45 : i32 to vector<1x128xi32>
    %112 = arith.cmpi slt, %110, %111 : vector<1x128xi32>
    %113 = arith.andi %108, %112 : vector<1x128xi1>
    %c-1_i32_46 = arith.constant -1 : i32
    %114 = vector.broadcast %c-1_i32_46 : i32 to vector<1x128xi32>
    %115 = arith.addi %1, %114 : vector<1x128xi32>
    %c0_i32_47 = arith.constant 0 : i32
    %116 = vector.broadcast %c0_i32_47 : i32 to vector<1x128xi32>
    %117 = arith.cmpi sge, %115, %116 : vector<1x128xi32>
    %118 = arith.andi %113, %117 : vector<1x128xi1>
    %c-1_i32_48 = arith.constant -1 : i32
    %119 = vector.broadcast %c-1_i32_48 : i32 to vector<1x128xi32>
    %120 = arith.addi %1, %119 : vector<1x128xi32>
    %c8_i32_49 = arith.constant 8 : i32
    %121 = vector.broadcast %c8_i32_49 : i32 to vector<1x128xi32>
    %122 = arith.cmpi slt, %120, %121 : vector<1x128xi32>
    %123 = arith.andi %118, %122 : vector<1x128xi1>
    %cst_50 = arith.constant 0.000000e+00 : f32
    %124 = vector.shape_cast %123 : vector<1x128xi1> to vector<1x128xi1>
    %125 = vector.broadcast %124 : vector<1x128xi1> to vector<8x128xi1>
    %126 = vector.broadcast %cst_50 : f32 to vector<8x128xf32>
    %127 = arith.select %125, %104, %126 : vector<8x128xi1>, vector<8x128xf32>
    %c0_i32_51 = arith.constant 0 : i32
    %128 = vector.broadcast %c0_i32_51 : i32 to vector<1x128xi32>
    %129 = arith.addi %0, %128 : vector<1x128xi32>
    %c0_i32_52 = arith.constant 0 : i32
    %130 = vector.broadcast %c0_i32_52 : i32 to vector<1x128xi32>
    %131 = arith.cmpi sge, %129, %130 : vector<1x128xi32>
    %c0_i32_53 = arith.constant 0 : i32
    %132 = vector.broadcast %c0_i32_53 : i32 to vector<1x128xi32>
    %133 = arith.addi %0, %132 : vector<1x128xi32>
    %c8_i32_54 = arith.constant 8 : i32
    %134 = vector.broadcast %c8_i32_54 : i32 to vector<1x128xi32>
    %135 = arith.cmpi slt, %133, %134 : vector<1x128xi32>
    %136 = arith.andi %131, %135 : vector<1x128xi1>
    %c0_i32_55 = arith.constant 0 : i32
    %137 = vector.broadcast %c0_i32_55 : i32 to vector<1x128xi32>
    %138 = arith.addi %1, %137 : vector<1x128xi32>
    %c0_i32_56 = arith.constant 0 : i32
    %139 = vector.broadcast %c0_i32_56 : i32 to vector<1x128xi32>
    %140 = arith.cmpi sge, %138, %139 : vector<1x128xi32>
    %141 = arith.andi %136, %140 : vector<1x128xi1>
    %c0_i32_57 = arith.constant 0 : i32
    %142 = vector.broadcast %c0_i32_57 : i32 to vector<1x128xi32>
    %143 = arith.addi %1, %142 : vector<1x128xi32>
    %c8_i32_58 = arith.constant 8 : i32
    %144 = vector.broadcast %c8_i32_58 : i32 to vector<1x128xi32>
    %145 = arith.cmpi slt, %143, %144 : vector<1x128xi32>
    %146 = arith.andi %141, %145 : vector<1x128xi1>
    %cst_59 = arith.constant 0.000000e+00 : f32
    %147 = vector.shape_cast %146 : vector<1x128xi1> to vector<1x128xi1>
    %148 = vector.broadcast %147 : vector<1x128xi1> to vector<8x128xi1>
    %149 = vector.broadcast %cst_59 : f32 to vector<8x128xf32>
    %150 = arith.select %148, %31, %149 : vector<8x128xi1>, vector<8x128xf32>
    %c127_i32 = arith.constant 127 : i32
    %151 = tpu.dynamic_rotate %31 by %c127_i32 dim 1 : vector<8x128xf32>, i32 -> vector<8x128xf32>
    %c0_i32_60 = arith.constant 0 : i32
    %152 = vector.broadcast %c0_i32_60 : i32 to vector<1x128xi32>
    %153 = arith.addi %0, %152 : vector<1x128xi32>
    %c0_i32_61 = arith.constant 0 : i32
    %154 = vector.broadcast %c0_i32_61 : i32 to vector<1x128xi32>
    %155 = arith.cmpi sge, %153, %154 : vector<1x128xi32>
    %c0_i32_62 = arith.constant 0 : i32
    %156 = vector.broadcast %c0_i32_62 : i32 to vector<1x128xi32>
    %157 = arith.addi %0, %156 : vector<1x128xi32>
    %c8_i32_63 = arith.constant 8 : i32
    %158 = vector.broadcast %c8_i32_63 : i32 to vector<1x128xi32>
    %159 = arith.cmpi slt, %157, %158 : vector<1x128xi32>
    %160 = arith.andi %155, %159 : vector<1x128xi1>
    %c1_i32_64 = arith.constant 1 : i32
    %161 = vector.broadcast %c1_i32_64 : i32 to vector<1x128xi32>
    %162 = arith.addi %1, %161 : vector<1x128xi32>
    %c0_i32_65 = arith.constant 0 : i32
    %163 = vector.broadcast %c0_i32_65 : i32 to vector<1x128xi32>
    %164 = arith.cmpi sge, %162, %163 : vector<1x128xi32>
    %165 = arith.andi %160, %164 : vector<1x128xi1>
    %c1_i32_66 = arith.constant 1 : i32
    %166 = vector.broadcast %c1_i32_66 : i32 to vector<1x128xi32>
    %167 = arith.addi %1, %166 : vector<1x128xi32>
    %c8_i32_67 = arith.constant 8 : i32
    %168 = vector.broadcast %c8_i32_67 : i32 to vector<1x128xi32>
    %169 = arith.cmpi slt, %167, %168 : vector<1x128xi32>
    %170 = arith.andi %165, %169 : vector<1x128xi1>
    %cst_68 = arith.constant 0.000000e+00 : f32
    %171 = vector.shape_cast %170 : vector<1x128xi1> to vector<1x128xi1>
    %172 = vector.broadcast %171 : vector<1x128xi1> to vector<8x128xi1>
    %173 = vector.broadcast %cst_68 : f32 to vector<8x128xf32>
    %174 = arith.select %172, %151, %173 : vector<8x128xi1>, vector<8x128xf32>
    %c121_i32 = arith.constant 121 : i32
    %175 = tpu.dynamic_rotate %31 by %c121_i32 dim 1 : vector<8x128xf32>, i32 -> vector<8x128xf32>
    %c1_i32_69 = arith.constant 1 : i32
    %176 = vector.broadcast %c1_i32_69 : i32 to vector<1x128xi32>
    %177 = arith.addi %0, %176 : vector<1x128xi32>
    %c0_i32_70 = arith.constant 0 : i32
    %178 = vector.broadcast %c0_i32_70 : i32 to vector<1x128xi32>
    %179 = arith.cmpi sge, %177, %178 : vector<1x128xi32>
    %c1_i32_71 = arith.constant 1 : i32
    %180 = vector.broadcast %c1_i32_71 : i32 to vector<1x128xi32>
    %181 = arith.addi %0, %180 : vector<1x128xi32>
    %c8_i32_72 = arith.constant 8 : i32
    %182 = vector.broadcast %c8_i32_72 : i32 to vector<1x128xi32>
    %183 = arith.cmpi slt, %181, %182 : vector<1x128xi32>
    %184 = arith.andi %179, %183 : vector<1x128xi1>
    %c-1_i32_73 = arith.constant -1 : i32
    %185 = vector.broadcast %c-1_i32_73 : i32 to vector<1x128xi32>
    %186 = arith.addi %1, %185 : vector<1x128xi32>
    %c0_i32_74 = arith.constant 0 : i32
    %187 = vector.broadcast %c0_i32_74 : i32 to vector<1x128xi32>
    %188 = arith.cmpi sge, %186, %187 : vector<1x128xi32>
    %189 = arith.andi %184, %188 : vector<1x128xi1>
    %c-1_i32_75 = arith.constant -1 : i32
    %190 = vector.broadcast %c-1_i32_75 : i32 to vector<1x128xi32>
    %191 = arith.addi %1, %190 : vector<1x128xi32>
    %c8_i32_76 = arith.constant 8 : i32
    %192 = vector.broadcast %c8_i32_76 : i32 to vector<1x128xi32>
    %193 = arith.cmpi slt, %191, %192 : vector<1x128xi32>
    %194 = arith.andi %189, %193 : vector<1x128xi1>
    %cst_77 = arith.constant 0.000000e+00 : f32
    %195 = vector.shape_cast %194 : vector<1x128xi1> to vector<1x128xi1>
    %196 = vector.broadcast %195 : vector<1x128xi1> to vector<8x128xi1>
    %197 = vector.broadcast %cst_77 : f32 to vector<8x128xf32>
    %198 = arith.select %196, %175, %197 : vector<8x128xi1>, vector<8x128xf32>
    %c120_i32 = arith.constant 120 : i32
    %199 = tpu.dynamic_rotate %31 by %c120_i32 dim 1 : vector<8x128xf32>, i32 -> vector<8x128xf32>
    %c1_i32_78 = arith.constant 1 : i32
    %200 = vector.broadcast %c1_i32_78 : i32 to vector<1x128xi32>
    %201 = arith.addi %0, %200 : vector<1x128xi32>
    %c0_i32_79 = arith.constant 0 : i32
    %202 = vector.broadcast %c0_i32_79 : i32 to vector<1x128xi32>
    %203 = arith.cmpi sge, %201, %202 : vector<1x128xi32>
    %c1_i32_80 = arith.constant 1 : i32
    %204 = vector.broadcast %c1_i32_80 : i32 to vector<1x128xi32>
    %205 = arith.addi %0, %204 : vector<1x128xi32>
    %c8_i32_81 = arith.constant 8 : i32
    %206 = vector.broadcast %c8_i32_81 : i32 to vector<1x128xi32>
    %207 = arith.cmpi slt, %205, %206 : vector<1x128xi32>
    %208 = arith.andi %203, %207 : vector<1x128xi1>
    %c0_i32_82 = arith.constant 0 : i32
    %209 = vector.broadcast %c0_i32_82 : i32 to vector<1x128xi32>
    %210 = arith.addi %1, %209 : vector<1x128xi32>
    %c0_i32_83 = arith.constant 0 : i32
    %211 = vector.broadcast %c0_i32_83 : i32 to vector<1x128xi32>
    %212 = arith.cmpi sge, %210, %211 : vector<1x128xi32>
    %213 = arith.andi %208, %212 : vector<1x128xi1>
    %c0_i32_84 = arith.constant 0 : i32
    %214 = vector.broadcast %c0_i32_84 : i32 to vector<1x128xi32>
    %215 = arith.addi %1, %214 : vector<1x128xi32>
    %c8_i32_85 = arith.constant 8 : i32
    %216 = vector.broadcast %c8_i32_85 : i32 to vector<1x128xi32>
    %217 = arith.cmpi slt, %215, %216 : vector<1x128xi32>
    %218 = arith.andi %213, %217 : vector<1x128xi1>
    %cst_86 = arith.constant 0.000000e+00 : f32
    %219 = vector.shape_cast %218 : vector<1x128xi1> to vector<1x128xi1>
    %220 = vector.broadcast %219 : vector<1x128xi1> to vector<8x128xi1>
    %221 = vector.broadcast %cst_86 : f32 to vector<8x128xf32>
    %222 = arith.select %220, %199, %221 : vector<8x128xi1>, vector<8x128xf32>
    %c119_i32 = arith.constant 119 : i32
    %223 = tpu.dynamic_rotate %31 by %c119_i32 dim 1 : vector<8x128xf32>, i32 -> vector<8x128xf32>
    %c1_i32_87 = arith.constant 1 : i32
    %224 = vector.broadcast %c1_i32_87 : i32 to vector<1x128xi32>
    %225 = arith.addi %0, %224 : vector<1x128xi32>
    %c0_i32_88 = arith.constant 0 : i32
    %226 = vector.broadcast %c0_i32_88 : i32 to vector<1x128xi32>
    %227 = arith.cmpi sge, %225, %226 : vector<1x128xi32>
    %c1_i32_89 = arith.constant 1 : i32
    %228 = vector.broadcast %c1_i32_89 : i32 to vector<1x128xi32>
    %229 = arith.addi %0, %228 : vector<1x128xi32>
    %c8_i32_90 = arith.constant 8 : i32
    %230 = vector.broadcast %c8_i32_90 : i32 to vector<1x128xi32>
    %231 = arith.cmpi slt, %229, %230 : vector<1x128xi32>
    %232 = arith.andi %227, %231 : vector<1x128xi1>
    %c1_i32_91 = arith.constant 1 : i32
    %233 = vector.broadcast %c1_i32_91 : i32 to vector<1x128xi32>
    %234 = arith.addi %1, %233 : vector<1x128xi32>
    %c0_i32_92 = arith.constant 0 : i32
    %235 = vector.broadcast %c0_i32_92 : i32 to vector<1x128xi32>
    %236 = arith.cmpi sge, %234, %235 : vector<1x128xi32>
    %237 = arith.andi %232, %236 : vector<1x128xi1>
    %c1_i32_93 = arith.constant 1 : i32
    %238 = vector.broadcast %c1_i32_93 : i32 to vector<1x128xi32>
    %239 = arith.addi %1, %238 : vector<1x128xi32>
    %c8_i32_94 = arith.constant 8 : i32
    %240 = vector.broadcast %c8_i32_94 : i32 to vector<1x128xi32>
    %241 = arith.cmpi slt, %239, %240 : vector<1x128xi32>
    %242 = arith.andi %237, %241 : vector<1x128xi1>
    %cst_95 = arith.constant 0.000000e+00 : f32
    %243 = vector.shape_cast %242 : vector<1x128xi1> to vector<1x128xi1>
    %244 = vector.broadcast %243 : vector<1x128xi1> to vector<8x128xi1>
    %245 = vector.broadcast %cst_95 : f32 to vector<8x128xf32>
    %246 = arith.select %244, %223, %245 : vector<8x128xi1>, vector<8x128xf32>
    %247 = tpu.concatenate %55, %79, %103, %127, %150, %174, %198, %222, %246 in 0 : vector<8x128xf32>, vector<8x128xf32>, vector<8x128xf32>, vector<8x128xf32>, vector<8x128xf32>, vector<8x128xf32>, vector<8x128xf32>, vector<8x128xf32>, vector<8x128xf32> -> vector<72x128xf32>
    %c0_96 = arith.constant 0 : index
    %c0_97 = arith.constant 0 : index
    %248 = vector.load %arg5[%c0_96, %c0_97] : memref<8x72xf32, #tpu.memory_space<vmem>>, vector<8x72xf32>
    %cst_98 = arith.constant dense<0.000000e+00> : vector<8x128xf32>
    %249 = tpu.matmul %248, %247, %cst_98 {dimension_numbers = #tpu.dot_dimension_numbers<[1], [0], [0], [1], [0, 0, 1, 1], [], []>} : vector<8x72xf32>, vector<72x128xf32>, vector<8x128xf32> -> vector<8x128xf32>
    %cst_99 = arith.constant dense<0.000000e+00> : vector<8xf32>
    %250 = vector.multi_reduction <add>, %249, %cst_99 [1] : vector<8x128xf32> to vector<8xf32>
    %251 = vector.shape_cast %250 : vector<8xf32> to vector<8x1xf32>
    %252 = arith.mulf %249, %249 : vector<8x128xf32>
    %cst_100 = arith.constant dense<0.000000e+00> : vector<8xf32>
    %253 = vector.multi_reduction <add>, %252, %cst_100 [1] : vector<8x128xf32> to vector<8xf32>
    %254 = vector.shape_cast %253 : vector<8xf32> to vector<8x1xf32>
    %cst_101 = arith.constant 7.812500e-03 : f32
    %255 = vector.broadcast %cst_101 : f32 to vector<8x1xf32>
    %256 = arith.mulf %251, %255 : vector<8x1xf32>
    %cst_102 = arith.constant 7.812500e-03 : f32
    %257 = vector.broadcast %cst_102 : f32 to vector<8x1xf32>
    %258 = arith.mulf %254, %257 : vector<8x1xf32>
    %259 = arith.mulf %256, %256 : vector<8x1xf32>
    %260 = arith.subf %258, %259 : vector<8x1xf32>
    %261 = vector.broadcast %256 : vector<8x1xf32> to vector<8x128xf32>
    %262 = arith.subf %249, %261 : vector<8x128xf32>
    %cst_103 = arith.constant 9.99999974E-6 : f32
    %263 = vector.broadcast %cst_103 : f32 to vector<8x1xf32>
    %264 = arith.addf %260, %263 : vector<8x1xf32>
    %265 = math.rsqrt %264 : vector<8x1xf32>
    %266 = vector.broadcast %265 : vector<8x1xf32> to vector<8x128xf32>
    %267 = arith.mulf %262, %266 : vector<8x128xf32>
    %c0_104 = arith.constant 0 : index
    %c0_105 = arith.constant 0 : index
    %268 = vector.load %arg6[%c0_104, %c0_105] : memref<16x16xf32, #tpu.memory_space<vmem>>, vector<16x16xf32>
    %c0_106 = arith.constant 0 : index
    %c0_107 = arith.constant 0 : index
    %269 = vector.load %arg8[%c0_106, %c0_107] : memref<16x2xf32, #tpu.memory_space<vmem>>, vector<16x2xf32>
    %cst_108 = arith.constant dense<0.000000e+00> : vector<16x2xf32>
    %270 = tpu.matmul %268, %269, %cst_108 {dimension_numbers = #tpu.dot_dimension_numbers<[1], [0], [0], [1], [0, 0, 1, 1], [], []>} : vector<16x16xf32>, vector<16x2xf32>, vector<16x2xf32> -> vector<16x2xf32>
    %c0_109 = arith.constant 0 : index
    %c0_110 = arith.constant 0 : index
    %271 = vector.load %arg7[%c0_109, %c0_110] : memref<16x1xf32, #tpu.memory_space<vmem>>, vector<16x1xf32>
    %272 = vector.broadcast %271 : vector<16x1xf32> to vector<16x2xf32>
    %273 = arith.addf %270, %272 : vector<16x2xf32>
    %274 = vector.extract_strided_slice %273 {offsets = [0, 0], sizes = [8, 2], strides = [1, 1]} : vector<16x2xf32> to vector<8x2xf32>
    %275 = vector.extract_strided_slice %273 {offsets = [8, 0], sizes = [8, 2], strides = [1, 1]} : vector<16x2xf32> to vector<8x2xf32>
    %cst_111 = arith.constant 0.000000e+00 : f32
    %276 = vector.broadcast %cst_111 : f32 to vector<8x128xf32>
    %cst_112 = arith.constant 0.000000e+00 : f32
    %277 = vector.broadcast %cst_112 : f32 to vector<8x128xf32>
    %c0_i32_113 = arith.constant 0 : i32
    %278 = vector.broadcast %c0_i32_113 : i32 to vector<1x128xi32>
    %279 = arith.cmpi eq, %2, %278 : vector<1x128xi32>
    %280 = vector.extract_strided_slice %274 {offsets = [0, 0], sizes = [8, 1], strides = [1, 1]} : vector<8x2xf32> to vector<8x1xf32>
    %281 = vector.shape_cast %279 : vector<1x128xi1> to vector<1x128xi1>
    %282 = vector.broadcast %281 : vector<1x128xi1> to vector<8x128xi1>
    %283 = vector.shape_cast %280 : vector<8x1xf32> to vector<8x1xf32>
    %284 = vector.broadcast %283 : vector<8x1xf32> to vector<8x128xf32>
    %285 = arith.select %282, %284, %276 : vector<8x128xi1>, vector<8x128xf32>
    %286 = vector.extract_strided_slice %275 {offsets = [0, 0], sizes = [8, 1], strides = [1, 1]} : vector<8x2xf32> to vector<8x1xf32>
    %287 = vector.shape_cast %279 : vector<1x128xi1> to vector<1x128xi1>
    %288 = vector.broadcast %287 : vector<1x128xi1> to vector<8x128xi1>
    %289 = vector.shape_cast %286 : vector<8x1xf32> to vector<8x1xf32>
    %290 = vector.broadcast %289 : vector<8x1xf32> to vector<8x128xf32>
    %291 = arith.select %288, %290, %277 : vector<8x128xi1>, vector<8x128xf32>
    %c1_i32_114 = arith.constant 1 : i32
    %292 = vector.broadcast %c1_i32_114 : i32 to vector<1x128xi32>
    %293 = arith.cmpi eq, %2, %292 : vector<1x128xi32>
    %294 = vector.extract_strided_slice %274 {offsets = [0, 1], sizes = [8, 1], strides = [1, 1]} : vector<8x2xf32> to vector<8x1xf32>
    %295 = vector.shape_cast %293 : vector<1x128xi1> to vector<1x128xi1>
    %296 = vector.broadcast %295 : vector<1x128xi1> to vector<8x128xi1>
    %297 = vector.shape_cast %294 : vector<8x1xf32> to vector<8x1xf32>
    %298 = vector.broadcast %297 : vector<8x1xf32> to vector<8x128xf32>
    %299 = arith.select %296, %298, %285 : vector<8x128xi1>, vector<8x128xf32>
    %300 = vector.extract_strided_slice %275 {offsets = [0, 1], sizes = [8, 1], strides = [1, 1]} : vector<8x2xf32> to vector<8x1xf32>
    %301 = vector.shape_cast %293 : vector<1x128xi1> to vector<1x128xi1>
    %302 = vector.broadcast %301 : vector<1x128xi1> to vector<8x128xi1>
    %303 = vector.shape_cast %300 : vector<8x1xf32> to vector<8x1xf32>
    %304 = vector.broadcast %303 : vector<8x1xf32> to vector<8x128xf32>
    %305 = arith.select %302, %304, %291 : vector<8x128xi1>, vector<8x128xf32>
    %cst_115 = arith.constant 1.000000e+00 : f32
    %306 = vector.broadcast %cst_115 : f32 to vector<8x128xf32>
    %307 = arith.addf %306, %299 : vector<8x128xf32>
    %308 = arith.mulf %307, %267 : vector<8x128xf32>
    %309 = arith.addf %308, %305 : vector<8x128xf32>
    %cst_116 = arith.constant 0.000000e+00 : f32
    %310 = vector.broadcast %cst_116 : f32 to vector<8x128xf32>
    %311 = arith.maximumf %309, %310 : vector<8x128xf32>
    %c0_117 = arith.constant 0 : index
    %c0_118 = arith.constant 0 : index
    %312 = vector.load %arg9[%c0_117, %c0_118] : memref<32x8xf32, #tpu.memory_space<vmem>>, vector<32x8xf32>
    %cst_119 = arith.constant dense<0.000000e+00> : vector<32x128xf32>
    %313 = tpu.matmul %312, %311, %cst_119 {dimension_numbers = #tpu.dot_dimension_numbers<[1], [0], [0], [1], [0, 0, 1, 1], [], []>} : vector<32x8xf32>, vector<8x128xf32>, vector<32x128xf32> -> vector<32x128xf32>
    %cst_120 = arith.constant dense<0.000000e+00> : vector<32xf32>
    %314 = vector.multi_reduction <add>, %313, %cst_120 [1] : vector<32x128xf32> to vector<32xf32>
    %315 = vector.shape_cast %314 : vector<32xf32> to vector<32x1xf32>
    %316 = arith.mulf %313, %313 : vector<32x128xf32>
    %cst_121 = arith.constant dense<0.000000e+00> : vector<32xf32>
    %317 = vector.multi_reduction <add>, %316, %cst_121 [1] : vector<32x128xf32> to vector<32xf32>
    %318 = vector.shape_cast %317 : vector<32xf32> to vector<32x1xf32>
    %cst_122 = arith.constant 7.812500e-03 : f32
    %319 = vector.broadcast %cst_122 : f32 to vector<32x1xf32>
    %320 = arith.mulf %315, %319 : vector<32x1xf32>
    %cst_123 = arith.constant 7.812500e-03 : f32
    %321 = vector.broadcast %cst_123 : f32 to vector<32x1xf32>
    %322 = arith.mulf %318, %321 : vector<32x1xf32>
    %323 = arith.mulf %320, %320 : vector<32x1xf32>
    %324 = arith.subf %322, %323 : vector<32x1xf32>
    %325 = vector.broadcast %320 : vector<32x1xf32> to vector<32x128xf32>
    %326 = arith.subf %313, %325 : vector<32x128xf32>
    %cst_124 = arith.constant 9.99999974E-6 : f32
    %327 = vector.broadcast %cst_124 : f32 to vector<32x1xf32>
    %328 = arith.addf %324, %327 : vector<32x1xf32>
    %329 = math.rsqrt %328 : vector<32x1xf32>
    %330 = vector.broadcast %329 : vector<32x1xf32> to vector<32x128xf32>
    %331 = arith.mulf %326, %330 : vector<32x128xf32>
    %c0_125 = arith.constant 0 : index
    %c0_126 = arith.constant 0 : index
    %332 = vector.load %arg10[%c0_125, %c0_126] : memref<32x1xf32, #tpu.memory_space<vmem>>, vector<32x1xf32>
    %333 = vector.broadcast %332 : vector<32x1xf32> to vector<32x128xf32>
    %334 = arith.mulf %331, %333 : vector<32x128xf32>
    %c0_127 = arith.constant 0 : index
    %c0_128 = arith.constant 0 : index
    %335 = vector.load %arg11[%c0_127, %c0_128] : memref<32x1xf32, #tpu.memory_space<vmem>>, vector<32x1xf32>
    %336 = vector.broadcast %335 : vector<32x1xf32> to vector<32x128xf32>
    %337 = arith.addf %334, %336 : vector<32x128xf32>
    %338 = arith.addf %337, %3 : vector<32x128xf32>
    %cst_129 = arith.constant 0.000000e+00 : f32
    %339 = vector.broadcast %cst_129 : f32 to vector<32x128xf32>
    %340 = arith.maximumf %338, %339 : vector<32x128xf32>
    %c0_130 = arith.constant 0 : index
    %c0_131 = arith.constant 0 : index
    %341 = vector.load %arg12[%c0_130, %c0_131] : memref<32x128xf32, #tpu.memory_space<vmem>>, vector<32x128xf32>
    tpu.vector_store %arg12[%c0_130, %c0_131], %340 {strides = array<i32>} : memref<32x128xf32, #tpu.memory_space<vmem>>, vector<32x128xf32>,
    return
  }
}

</mosaic_0001>

<bundles_post_ra>
// kernel: bottleneck_upatk_modulated.1
= control target key start
LH: loop header
LB: loop body
LE: loop exit
PB: predicated region body
PF: predicated region fallthrough
CT: control target
= control target key end

     0   :  { %v864_v0 = vmov 0.0|0.0   ;;  %vm865_vm0 = vmmov 0   ;;  %v866_v4 = vmov 0.0   ;;  %vm49_vm1 = vcmask 261120   ;;  %s871_s22 = smov 119   ;;  %s872_s23 = smov 1   ;;  %s1191_s0 = inlined_call_operand.vmem [shape: f32[32,128], index: 0, kind: input, shape index: {}]   ;;  %s1192_s2 = inlined_call_operand.vmem [shape: f32[8,32], index: 2, kind: input, shape index: {}]   ;;  %s1193_s3 = inlined_call_operand.vmem [shape: f32[8,1], index: 3, kind: input, shape index: {}]   ;;  %s1194_s4 = inlined_call_operand.vmem [shape: f32[8,1], index: 4, kind: input, shape index: {}]   ;;  %s1195_s8 = inlined_call_operand.vmem [shape: f32[16,2], index: 8, kind: input, shape index: {}]   ;;  %s1196_s6 = inlined_call_operand.vmem [shape: f32[16,16], index: 6, kind: input, shape index: {}]   ;;  %s1197_s7 = inlined_call_operand.vmem [shape: f32[16,1], index: 7, kind: input, shape index: {}]   ;;  %s1198_s1 = inlined_call_operand.vmem [shape: s32[3,128], index: 1, kind: input, shape index: {}]   ;;  %s1199_s5 = inlined_call_operand.vmem [shape: f32[8,72], index: 5, kind: input, shape index: {}]   ;;  %s1200_s9 = inlined_call_operand.vmem [shape: f32[32,8], index: 9, kind: input, shape index: {}]   ;;  %s1201_s10 = inlined_call_operand.vmem [shape: f32[32,1], index: 10, kind: input, shape index: {}]   ;;  %s1202_s11 = inlined_call_operand.vmem [shape: f32[32,1], index: 11, kind: input, shape index: {}]   ;;  %s1203_s12 = inlined_call_operand.vmem [shape: f32[32,128], index: 12, kind: output, shape index: {}]  }
   0x1   :  { %807 = vmatprep.subr.bf16.mxu0 %v864_v0  ;;  %v946_v1 = vld [vmem:[%s1191_s0] sm:$0xff]  ;;  %v951_v2 = vld [vmem:[%s1191_s0 + $0x8] sm:$0xff]  ;;  %v956_v3 = vld [vmem:[%s1191_s0 + $0x10] sm:$0xff]  ;;  %768 = vmatprep.mubr.msk.f32.mxu0 %vm865_vm0, %v866_v4  ;;  %vm371_vm2 = vcmask 130048   ;;  %v867_v9 = vmov 0   ;;  %s873_s24 = smov 127   ;;  %v163_v44 = vlaneseq }
   0x2   :  { %v808_v5 = vpack.c.bf16 %v951_v2, %v946_v1  ;;  %v964_v6 = vld [vmem:[%s1191_s0 + $0x18] sm:$0xff]  ;;  %813 = vmatprep.subr.bf16.mxu1 %v864_v0  ;;  %789 = vmatprep.mubr.msk.f32.mxu1 %vm865_vm0, %v866_v4  ;;  %v48_v8 = vld [vmem:[%s1192_s2] sm:$0xff]  ;;  %v358_v12 = vld [vmem:[%s1195_s8 + $0x8] sm:$0xff]  ;;  %s874_s25 = smov 121   ;;  %s875_s26 = smov 120  }
   0x3   :  { %v811_v7 = vpack.c.bf16 %v964_v6, %v956_v3  ;;  %846 = vset.pattern.permute.xlu1 %v867_v9  ;;  %v136_v10 = vld [vmem:[%s1193_s3] sm:$0xff]  ;;  %847 = vset.pattern.permute.xlu0 %v867_v9  ;;  %v356_v16 = vld [vmem:[%s1196_s6 + $0x8] sm:$0xff]  ;;  %v164_v45 = vshrl.u32 %v163_v44, 7 }
   0x4   :  { %809 = vmatpush3.bf16.msra.mxu0 %v808_v5  ;;  %v357_v11 = vld [vmem:[%s1195_s8] sm:$0xff]  ;;  %139 = vperm.xlu1 %846, %v136_v10   ;;  %s870_s8 = smov 7   ;;  %v360_v38 = vld [vmem:[%s1197_s7 + $0x8] sm:$0xff] }
   0x5   :  { %810 = vmatprep.subr.bf16.mxu0 %v864_v0  ;;  %v355_v13 = vld [vmem:[%s1196_s6] sm:$0xff]  ;;  %v829_v15 = vpack.c.bf16 %v358_v12, %v357_v11  ;;  %s869_s6 = smov 9   ;;  %v1034_v47 = vsub.s32 0, %v164_v45 }
   0x6   :  { %v143_v14 = vld [vmem:[%s1194_s4] sm:$0xff]  ;;  %s868_s4 = smov 8  }
   0x7   :  { %v359_v36 = vld [vmem:[%s1197_s7] sm:$0xff] }
   0x8   :  { %812 = vmatpush3.bf16.msra.mxu0 %v811_v7  ;;  %146 = vperm.xlu1 %846, %v143_v14   ;;  %v41_v39 = vld [vmem:[%s1198_s1] sm:$0x1]  ;;  %v42_v40 = vld [vmem:[%s1198_s1 + $0x1] sm:$0x1] }
   0x9   :  { %830 = vmatprep.subr.bf16.mxu0 %v829_v15  ;;  %v153_v41 = vadd.s32 4294967295, %v41_v39  ;;  %v157_v42 = vadd.s32 4294967295, %v42_v40  ;;  %vm1207_vm7 = vcmp.ge.s32.totalorder %v42_v40, 0  ;;  %vm173_vm11 = vcmp.lt.s32.totalorder %v42_v40, 8 }
   0xa   :  { %v184_v46 = vadd.s32 1, %v42_v40  ;;  %vm198_vm14 = vcmp.ge.s32.totalorder %v41_v39, 0  ;;  %vm199_vm15 = vcmp.lt.s32.totalorder %v41_v39, 8  ;;  %v232_v52 = vadd.s32 1, %v41_v39 }
   0xb   :  { %769 = vmatmul.mubr.msk.f32.vlgmr.msra.gmra.mrb[0].mxu0 %vm49_vm1, %v48_v8  ;;  %vm154_vm3 = vcmp.ge.s32.totalorder %v153_v41, 0  ;;  %vm155_vm4 = vcmp.lt.s32.totalorder %v153_v41, 8  ;;  %vm1204_vm6 = vcmp.ge.s32.totalorder %v157_v42, 0  ;;  %vm1206_vm9 = vcmp.lt.s32.totalorder %v157_v42, 8  ;;  %vm200_vm1 = vmand %vm198_vm14, %vm199_vm15 }
   0xc   :  { %796 = vmatprep.mubr.msk.f32.mxu0 %vm371_vm2, %v355_v13  ;;  %832 = vmatpush3.bf16.msra.mxu0 %v829_v15  ;;  %vm1022_vm5 = vmand %vm154_vm3, %vm155_vm4  ;;  %vm185_vm0 = vcmp.ge.s32.totalorder %v184_v46, 0  ;;  %vm1205_vm3 = vcmp.lt.s32.totalorder %v184_v46, 8 }
   0xd   :  { %vm159_vm8 = vmand %vm1022_vm5, %vm1204_vm6 }
   0xe   :  { %vm172_vm10 = vmand %vm1022_vm5, %vm1207_vm7 }
   0xf   :  { %797 = vmatmul.mubr.msk.f32.vlgmr.msra.gmra.mrb[2].mxu0 %vm371_vm2, %v356_v16  ;;  %vm161_vm12 = vmand %vm159_vm8, %vm1206_vm9 }
  0x10   :  { %vm174_vm13 = vmand %vm172_vm10, %vm173_vm11  ;;  %v162_v48 = vsel %vm161_vm12, 1, %v867_v9 }
  0x11   :  { %v175_v49 = vsel %vm174_vm13, 1, %v867_v9  ;;  %v166_v50 = vrot.slane %v162_v48, %v1034_v47  ;;  %vm186_vm2 = vmand %vm1022_vm5, %vm185_vm0 }
  0x12   :  { %v179_v51 = vrot.slane %v175_v49, %v1034_v47  ;;  %vm201_vm4 = vmand %vm200_vm1, %vm1204_vm6  ;;  %vm234_vm6 = vcmp.lt.s32.totalorder %v232_v52, 8 }
  0x13   :  { %vm188_vm8 = vmand %vm186_vm2, %vm1205_vm3  ;;  %vm1045_vm10 = vcmp.eq.s32.totalorder %v166_v50, 1  ;;  %vm233_vm2 = vcmp.ge.s32.totalorder %v232_v52, 0 }
  0x14   :  { %vm1049_vm12 = vcmp.eq.s32.totalorder %v179_v51, 1  ;;  %vm202_vm13 = vmand %vm201_vm4, %vm1206_vm9  ;;  %v189_v55 = vsel %vm188_vm8, 1, %v867_v9  ;;  %vm1214_vm4 = vcmp.lt.s32.totalorder %v184_v46, 8 }
  0x15   :  { %vm210_vm14 = vmand %vm200_vm1, %vm1207_vm7  ;;  %v203_v56 = vsel %vm202_vm13, 1, %v867_v9  ;;  %v193_v61 = vrot.slane %v189_v55, %v1034_v47 }
  0x16   :  { %vm221_vm5 = vmand %vm200_vm1, %vm185_vm0  ;;  %v207_v62 = vrot.slane %v203_v56, %v1034_v47  ;;  %vm1217_vm1 = vcmp.ge.s32.totalorder %v157_v42, 0 }
  0x17   :  { %vm815_vm15 = vmpackc.low %vm1049_vm12, %vm1045_vm10  ;;  %vm194_vm12 = vcmp.eq.s32.totalorder %v193_v61, 1  ;;  %v496_v61 = vld [vmem:[%s1200_s9 + $0x18] sm:$0xff] }
  0x18   :  { %vm211_vm3 = vmand %vm210_vm14, %vm173_vm11  ;;  %vm208_vm13 = vcmp.eq.s32.totalorder %v207_v62, 1 }
  0x19   :  { %vm222_vm9 = vmand %vm221_vm5, %vm1214_vm4  ;;  %v212_v63 = vsel %vm211_vm3, 1, %v867_v9  ;;  %vm1219_vm3 = vcmp.lt.s32.totalorder %v157_v42, 8 }
  0x1a   :  { %vm1064_vm7 = vmand %vm233_vm2, %vm234_vm6  ;;  %v223_v5 = vsel %vm222_vm9, 1, %v867_v9  ;;  %vm1218_vm6 = vcmp.ge.s32.totalorder %v42_v40, 0  ;;  %v216_v8 = vrot.slane %v212_v63, %v1034_v47 }
  0x1b   :  { %vm236_vm8 = vmand %vm1064_vm7, %vm1217_vm1  ;;  %v227_v10 = vrot.slane %v223_v5, %v1034_v47 }
  0x1c   :  { %vm247_vm10 = vmand %vm1064_vm7, %vm1218_vm6 }
  0x1d   :  { %vm237_vm9 = vmand %vm236_vm8, %vm1219_vm3  ;;  %vm228_vm2 = vcmp.eq.s32.totalorder %v227_v10, 1 }
  0x1e   :  { %vm248_vm14 = vmand %vm247_vm10, %vm173_vm11  ;;  %v238_v13 = vsel %vm237_vm9, 1, %v867_v9  ;;  %vm1220_vm11 = vcmp.lt.s32.totalorder %v184_v46, 8 }
  0x1f   :  { %vm819_vm5 = vmpackc.low %vm208_vm13, %vm194_vm12  ;;  %v249_v14 = vsel %vm248_vm14, 1, %v867_v9  ;;  %vm268_vm12 = vcmask 588800   ;;  %vm497_vm13 = vcmask 64512  }
  0x20   :  { %vm258_vm4 = vmand %vm1064_vm7, %vm185_vm0 }
  0x21   :  { %vm259_vm8 = vmand %vm258_vm4, %vm1220_vm11 }
  0x83   :  { %v140_v27 = vpop.permute.xlu1 %139 }
  0x87   :  { %v147_v32 = vpop.permute.xlu1 %146 }
  0xde   :  { %v119_v17 = vpop.f32.mrb[0].mxu0 }
  0xdf   :  { %123 = vadd.xlane.f32.xlu0 %v119_v17  ;;  %v770_v18 = vpop.f32.mrb[1].mxu0  ;;  %v125_v19 = vmul.f32 %v119_v17, %v119_v17 }
  0xe0   :  { %v253_v18 = vrot.slane %v249_v14, %v1034_v47  ;;  %v648_v14 = vld [vmem:[%s1201_s10 + $0x8] sm:$0xff] }
  0xe2   :  { %v1004_v35 = vpop.f32.mrb[2].mxu0  ;;  %vm254_vm10 = vcmp.eq.s32.totalorder %v253_v18, 1  ;;  %v676_v18 = vld [vmem:[%s1202_s11 + $0x8] sm:$0xff] }
  0xe3   :  { %126 = vadd.xlane.f32.xlu0 %v125_v19  ;;  %v1011_v37 = vpop.f32.mrb[3].mxu0 }
 0x16c   :  { %v124_v20 = vpop.xlane.xlu0 %123 }
 0x16d   :  { %v128_v21 = vmul.f32 0.0078125, %v124_v20  ;;  %v260_v20 = vsel %vm259_vm8, 1, %v867_v9 }
 0x16f   :  { %v130_v23 = vmul.f32 %v128_v21, %v128_v21  ;;  %v132_v28 = vsub.f32 %v119_v17, %v128_v21  ;;  %v242_v17 = vrot.slane %v238_v13, %v1034_v47  ;;  %v647_v13 = vld [vmem:[%s1201_s10] sm:$0xff] }
 0x170   :  { %v127_v22 = vpop.xlane.xlu0 %126 }
 0x171   :  { %v129_v24 = vmul.f32 0.0078125, %v127_v22  ;;  %vm243_vm6 = vcmp.eq.s32.totalorder %v242_v17, 1  ;;  %v264_v22 = vrot.slane %v260_v20, %v1034_v47  ;;  %v675_v17 = vld [vmem:[%s1202_s11] sm:$0xff]  ;;  %v678_v20 = vld [vmem:[%s1202_s11 + $0x18] sm:$0xff] }
 0x172   :  { %vm827_vm7 = vmpackc.low %vm254_vm10, %vm243_vm6 }
 0x173   :  { %v131_v25 = vsub.f32 %v129_v24, %v130_v23  ;;  %vm265_vm0 = vcmp.eq.s32.totalorder %v264_v22, 1  ;;  %v267_v24 = vld [vmem:[%s1199_s5] sm:$0xff] }
 0x175   :  { %v133_v26 = vadd.f32 1e-05, %v131_v25 }
 0x177   :  { %852 = vrsqrt.f32 %v133_v26 }
 0x181   :  { %v853_v29 = vpop.eup %852 }
 0x182   :  { %v135_v30 = vmul.f32 %v853_v29, %v132_v28 }
 0x184   :  { %v142_v31 = vmul.f32 %v140_v27, %v135_v30  ;;  %v876_v27 = vmov 1  }
 0x186   :  { %v149_v33 = vadd.f32 %v147_v32, %v142_v31  ;;  %v493_v32 = vld [vmem:[%s1200_s9] sm:$0xff] }
 0x187   :  { %801 = vmatprep.mubr.msk.f32.mxu0 %vm497_vm13, %v493_v32 }
 0x188   :  { %v996_v34 = vmax.f32 %v149_v33, 0.0 }
 0x18a   :  { %169 = vrot.lane.b32.xlu1 %v996_v34, %s868_s4  ;;  %151 = vrot.lane.b32.xlu0 %v996_v34, %s869_s6 }
 0x18e   :  { %182 = vrot.lane.b32.xlu1 %v996_v34, %s870_s8  ;;  %256 = vrot.lane.b32.xlu0 %v996_v34, %s871_s22 }
 0x192   :  { %196 = vrot.lane.b32.xlu1 %v996_v34, %s872_s23  ;;  %368 = vperm.xlu0 %847, %v360_v38  }
 0x196   :  { %219 = vrot.lane.b32.xlu1 %v996_v34, %s873_s24  ;;  %848 = vset.pattern.permute.xlu0 %v876_v27 }
 0x19a   :  { %230 = vrot.lane.b32.xlu1 %v996_v34, %s874_s25 }
 0x19e   :  { %245 = vrot.lane.b32.xlu1 %v996_v34, %s875_s26 }
 0x1a2   :  { %363 = vperm.xlu1 %846, %v359_v36  }
 0x1fc   :  { %v170_v57 = vpop.permute.xlu1 %169  ;;  %v152_v58 = vpop.permute.xlu0 %151 }
 0x1fd   :  { %v814_v60 = vpack.c.bf16 %v170_v57, %v152_v58 }
 0x1ff   :  { %816 = vmatpush3.bf16.msk.msra.mxu1 %vm815_vm15, %v814_v60  ;;  %vm217_vm15 = vcmp.eq.s32.totalorder %v216_v8, 1 }
 0x200   :  { %v183_v7 = vpop.permute.xlu1 %182  ;;  %817 = vmatprep.subr.bf16.mxu1 %v864_v0  ;;  %vm823_vm1 = vmpackc.low %vm228_vm2, %vm217_vm15  ;;  %v257_v25 = vpop.permute.xlu0 %256 }
 0x204   :  { %v197_v11 = vpop.permute.xlu1 %196 }
 0x205   :  { %v818_v12 = vpack.c.bf16 %v197_v11, %v183_v7 }
 0x207   :  { %820 = vmatpush3.bf16.msk.msra.mxu1 %vm819_vm5, %v818_v12 }
 0x208   :  { %v220_v15 = vpop.permute.xlu1 %219  ;;  %821 = vmatprep.subr.bf16.mxu1 %v864_v0 }
 0x209   :  { %v822_v16 = vpack.c.bf16 %v220_v15, %v996_v34  ;;  %v43_v34 = vld [vmem:[%s1198_s1 + $0x2] sm:$0x1]  ;;  %v649_v15 = vld [vmem:[%s1201_s10 + $0x10] sm:$0xff] }
 0x20a   :  { %vm453_vm3 = vcmp.eq.s32.totalorder %v43_v34, 0  ;;  %vm472_vm9 = vcmp.eq.s32.totalorder %v43_v34, 1 }
 0x20b   :  { %824 = vmatpush3.bf16.msk.msra.mxu1 %vm823_vm1, %v822_v16  ;;  %v454_v41 = vsel %vm453_vm3, 1, %v867_v9  ;;  %v473_v44 = vsel %vm472_vm9, 1, %v867_v9  ;;  %v650_v16 = vld [vmem:[%s1201_s10 + $0x18] sm:$0xff] }
 0x20c   :  { %v231_v19 = vpop.permute.xlu1 %230  ;;  %825 = vmatprep.subr.bf16.mxu1 %v864_v0  ;;  %v458_v43 = vrot.slane %v454_v41, %v1034_v47  ;;  %v477_v45 = vrot.slane %v473_v44, %v1034_v47  ;;  %v495_v47 = vld [vmem:[%s1200_s9 + $0x10] sm:$0xff] }
 0x20e   :  { %vm459_vm14 = vcmp.eq.s32.totalorder %v458_v43, 1  ;;  %vm478_vm5 = vcmp.eq.s32.totalorder %v477_v45, 1 }
 0x210   :  { %v246_v21 = vpop.permute.xlu1 %245 }
 0x211   :  { %v826_v23 = vpack.c.bf16 %v246_v21, %v231_v19  ;;  %v677_v19 = vld [vmem:[%s1202_s11 + $0x10] sm:$0xff] }
 0x213   :  { %828 = vmatpush3.bf16.msk.msra.mxu1 %vm827_vm7, %v826_v23 }
 0x214   :  { %787 = vmatprep.subr.mxu1 %v866_v4  ;;  %v369_v4 = vpop.permute.xlu0 %368 }
 0x215   :  { %v450_v31 = vadd.f32 %v1004_v35, %v369_v4 }
 0x217   :  { %788 = vmatpush3.msk.msra.mxu1 %vm265_vm0, %v257_v25 }
 0x218   :  { %790 = vmatmul.mubr.msk.f32.vlgmr.msra.gmra.mrb[0].mxu1 %vm268_vm12, %v267_v24 }
 0x221   :  { %v364_v0 = vpop.permute.xlu1 %363 }
 0x222   :  { %v445_v26 = vadd.f32 %v1011_v37, %v364_v0 }
 0x224   :  { %462 = vperm.xlu1 %846, %v445_v26  }
 0x2a3   :  { %v463_v33 = vpop.permute.xlu1 %462 }
 0x2a4   :  { %v465_v49 = vsel %vm459_vm14, %v463_v33, 0.0 }
 0x2eb   :  { %v338_v28 = vpop.f32.mrb[0].mxu1 }
 0x2ec   :  { %v791_v29 = vpop.f32.mrb[1].mxu1  ;;  %342 = vadd.xlane.f32.xlu1 %v338_v28  ;;  %v344_v30 = vmul.f32 %v338_v28, %v338_v28 }
 0x2ee   :  { %345 = vadd.xlane.f32.xlu0 %v344_v30 }
 0x2fd   :  { %468 = vperm.xlu1 %846, %v450_v31  }
 0x301   :  { %849 = vset.pattern.permute.xlu1 %v876_v27 }
 0x302   :  { %485 = vperm.xlu1 %849, %v450_v31  }
 0x304   :  { %480 = vperm.xlu0 %848, %v445_v26  }
 0x306   :  { %851 = vset.pattern.permute.xlu1 %v867_v9 }
 0x308   :  { %850 = vset.pattern.permute.xlu0 %v867_v9  ;;  %v494_v9 = vld [vmem:[%s1200_s9 + $0x8] sm:$0xff] }
 0x379   :  { %v343_v35 = vpop.xlane.xlu1 %342 }
 0x37a   :  { %v347_v36 = vmul.f32 0.0078125, %v343_v35 }
 0x37b   :  { %v346_v37 = vpop.xlane.xlu0 %345 }
 0x37c   :  { %v349_v38 = vmul.f32 %v347_v36, %v347_v36  ;;  %v348_v39 = vmul.f32 0.0078125, %v346_v37  ;;  %v351_v51 = vsub.f32 %v338_v28, %v347_v36 }
 0x37d   :  { %v469_v46 = vpop.permute.xlu1 %468 }
 0x37e   :  { %v350_v40 = vsub.f32 %v348_v39, %v349_v38  ;;  %v471_v56 = vsel %vm459_vm14, %v469_v46, 0.0 }
 0x380   :  { %v352_v42 = vadd.f32 1e-05, %v350_v40 }
 0x381   :  { %v486_v53 = vpop.permute.xlu1 %485 }
 0x382   :  { %854 = vrsqrt.f32 %v352_v42  ;;  %v488_v58 = vsel %vm478_vm5, %v486_v53, %v471_v56 }
 0x383   :  { %v481_v48 = vpop.permute.xlu0 %480 }
 0x384   :  { %v483_v50 = vsel %vm478_vm5, %v481_v48, %v465_v49 }
 0x385   :  { %v489_v55 = vadd.f32 1.0, %v483_v50 }
 0x38c   :  { %v855_v52 = vpop.eup %854 }
 0x38d   :  { %v354_v54 = vmul.f32 %v855_v52, %v351_v51 }
 0x38f   :  { %v490_v57 = vmul.f32 %v489_v55, %v354_v54 }
 0x391   :  { %v491_v59 = vadd.f32 %v490_v57, %v488_v58 }
 0x393   :  { %v492_v60 = vmax.f32 %v491_v59, 0.0 }
 0x395   :  { %799 = vmatprep.subr.mxu0 %v492_v60 }
 0x396   :  { %800 = vmatpush3.msra.mxu0 %v492_v60 }
 0x397   :  { %802 = vmatmul.mubr.msk.f32.vlgmr.msra.gmra.mrb[4].mxu0 %vm497_vm13, %v494_v9 }
 0x398   :  { %804 = vmatprep.mubr.msk.f32.mxu0 %vm497_vm13, %v495_v47 }
 0x39b   :  { %805 = vmatmul.mubr.msk.f32.gmra.mrb[6].mxu0 %vm497_vm13, %v496_v61 }
 0x46a   :  { %v1127_v62 = vpop.f32.mrb[4].mxu0 }
 0x46b   :  { %597 = vadd.xlane.f32.xlu0 %v1127_v62  ;;  %v1130_v63 = vpop.f32.mrb[5].mxu0  ;;  %v604_v5 = vmul.f32 %v1127_v62, %v1127_v62 }
 0x46c   :  { %595 = vadd.xlane.f32.xlu1 %v1130_v63  ;;  %v603_v11 = vmul.f32 %v1130_v63, %v1130_v63 }
 0x46e   :  { %v1135_v7 = vpop.f32.mrb[6].mxu0 }
 0x46f   :  { %v1137_v8 = vpop.f32.mrb[7].mxu0  ;;  %v606_v12 = vmul.f32 %v1135_v7, %v1135_v7 }
 0x470   :  { %609 = vadd.xlane.f32.xlu1 %v604_v5  ;;  %v605_v10 = vmul.f32 %v1137_v8, %v1137_v8 }
 0x472   :  { %611 = vadd.xlane.f32.xlu0 %v605_v10 }
 0x474   :  { %607 = vadd.xlane.f32.xlu1 %v603_v11 }
 0x478   :  { %601 = vadd.xlane.f32.xlu1 %v1135_v7 }
 0x47c   :  { %599 = vadd.xlane.f32.xlu1 %v1137_v8 }
 0x480   :  { %613 = vadd.xlane.f32.xlu1 %v606_v12 }
 0x488   :  { %653 = vperm.xlu0 %850, %v647_v13  }
 0x491   :  { %658 = vperm.xlu1 %851, %v648_v14  }
 0x495   :  { %663 = vperm.xlu1 %851, %v649_v15  }
 0x499   :  { %668 = vperm.xlu1 %851, %v650_v16  }
 0x49d   :  { %681 = vperm.xlu1 %851, %v675_v17  }
 0x4a1   :  { %686 = vperm.xlu1 %851, %v676_v18  }
 0x4a5   :  { %691 = vperm.xlu1 %851, %v677_v19  }
 0x4a9   :  { %696 = vperm.xlu1 %851, %v678_v20  }
 0x4f8   :  { %v598_v23 = vpop.xlane.xlu0 %597 }
 0x4f9   :  { %v596_v21 = vpop.xlane.xlu1 %595  ;;  %v616_v25 = vmul.f32 0.0078125, %v598_v23 }
 0x4fa   :  { %v615_v24 = vmul.f32 0.0078125, %v596_v21 }
 0x4fb   :  { %v624_v30 = vmul.f32 %v616_v25, %v616_v25  ;;  %v632_v56 = vsub.f32 %v1127_v62, %v616_v25 }
 0x4fc   :  { %v623_v26 = vmul.f32 %v615_v24, %v615_v24  ;;  %v631_v51 = vsub.f32 %v1130_v63, %v615_v24 }
 0x4fd   :  { %v610_v22 = vpop.xlane.xlu1 %609 }
 0x4fe   :  { %v620_v28 = vmul.f32 0.0078125, %v610_v22 }
 0x4ff   :  { %v612_v34 = vpop.xlane.xlu0 %611 }
 0x500   :  { %v628_v31 = vsub.f32 %v620_v28, %v624_v30  ;;  %v621_v39 = vmul.f32 0.0078125, %v612_v34 }
 0x501   :  { %v608_v0 = vpop.xlane.xlu1 %607 }
 0x502   :  { %v619_v27 = vmul.f32 0.0078125, %v608_v0  ;;  %v636_v37 = vadd.f32 1e-05, %v628_v31 }
 0x504   :  { %v627_v29 = vsub.f32 %v619_v27, %v623_v26 }
 0x505   :  { %v602_v4 = vpop.xlane.xlu1 %601 }
 0x506   :  { %v635_v32 = vadd.f32 1e-05, %v627_v29  ;;  %v618_v35 = vmul.f32 0.0078125, %v602_v4 }
 0x507   :  { %v654_v54 = vpop.permute.xlu0 %653 }
 0x508   :  { %856 = vrsqrt.f32 %v635_v32  ;;  %v626_v41 = vmul.f32 %v618_v35, %v618_v35  ;;  %v634_v12 = vsub.f32 %v1135_v7, %v618_v35 }
 0x509   :  { %v600_v33 = vpop.xlane.xlu1 %599  ;;  %858 = vrsqrt.f32 %v636_v37 }
 0x50a   :  { %v617_v36 = vmul.f32 0.0078125, %v600_v33 }
 0x50c   :  { %v625_v38 = vmul.f32 %v617_v36, %v617_v36  ;;  %v633_v9 = vsub.f32 %v1137_v8, %v617_v36 }
 0x50d   :  { %v614_v40 = vpop.xlane.xlu1 %613 }
 0x50e   :  { %v629_v42 = vsub.f32 %v621_v39, %v625_v38  ;;  %v622_v43 = vmul.f32 0.0078125, %v614_v40 }
 0x510   :  { %v637_v44 = vadd.f32 1e-05, %v629_v42  ;;  %v630_v45 = vsub.f32 %v622_v43, %v626_v41 }
 0x511   :  { %v659_v46 = vpop.permute.xlu1 %658 }
 0x512   :  { %860 = vrsqrt.f32 %v637_v44  ;;  %v638_v48 = vadd.f32 1e-05, %v630_v45  ;;  %v857_v49 = vpop.eup %856 }
 0x513   :  { %v643_v52 = vmul.f32 %v857_v49, %v631_v51  ;;  %v859_v53 = vpop.eup %858 }
 0x514   :  { %862 = vrsqrt.f32 %v638_v48  ;;  %v644_v57 = vmul.f32 %v859_v53, %v632_v56 }
 0x515   :  { %v664_v50 = vpop.permute.xlu1 %663  ;;  %v671_v58 = vmul.f32 %v654_v54, %v643_v52 }
 0x516   :  { %v672_v61 = vmul.f32 %v659_v46, %v644_v57 }
 0x519   :  { %v669_v55 = vpop.permute.xlu1 %668 }
 0x51c   :  { %v861_v59 = vpop.eup %860 }
 0x51d   :  { %v682_v60 = vpop.permute.xlu1 %681  ;;  %v645_v5 = vmul.f32 %v861_v59, %v633_v9 }
 0x51e   :  { %v699_v47 = vadd.f32 %v682_v60, %v671_v58  ;;  %v863_v11 = vpop.eup %862 }
 0x51f   :  { %v673_v15 = vmul.f32 %v664_v50, %v645_v5  ;;  %v646_v16 = vmul.f32 %v863_v11, %v634_v12 }
 0x520   :  { %v703_v10 = vadd.f32 %v699_v47, %v946_v1 }
 0x521   :  { %v687_v63 = vpop.permute.xlu1 %686  ;;  %v674_v19 = vmul.f32 %v669_v55, %v646_v16 }
 0x522   :  { %v707_v13 = vmax.f32 %v703_v10, 0.0  ;;  %v700_v14 = vadd.f32 %v687_v63, %v672_v61 }
 0x524   :  { %711 = vst [vmem:[%s1203_s12] sm:$0xff] %v707_v13  ;;  %v704_v62 = vadd.f32 %v700_v14, %v951_v2 }
 0x525   :  { %v692_v8 = vpop.permute.xlu1 %691 }
 0x526   :  { %v708_v17 = vmax.f32 %v704_v62, 0.0  ;;  %v701_v18 = vadd.f32 %v692_v8, %v673_v15 }
 0x528   :  { %712 = vst [vmem:[%s1203_s12 + $0x8] sm:$0xff] %v708_v17  ;;  %v705_v1 = vadd.f32 %v701_v18, %v956_v3 }
 0x529   :  { %v697_v7 = vpop.permute.xlu1 %696 }
 0x52a   :  { %v709_v20 = vmax.f32 %v705_v1, 0.0  ;;  %v702_v21 = vadd.f32 %v697_v7, %v674_v19 }
 0x52c   :  { %713 = vst [vmem:[%s1203_s12 + $0x10] sm:$0xff] %v709_v20  ;;  %v706_v22 = vadd.f32 %v702_v21, %v964_v6 }
 0x52e   :  { %v710_v2 = vmax.f32 %v706_v22, 0.0 }
 0x530   :  { %714 = vst [vmem:[%s1203_s12 + $0x18] sm:$0xff] %v710_v2 }

</bundles_post_ra>
